<compile_context>
chip_gen: v7x
topology: tpu7x:2x2x1
jax: 0.10.0
libtpu: 0.0.40
codegen_flags: <defaults>
</compile_context>

<pallas_src>
import functools

import jax
import jax.numpy as jnp
from jax.experimental import pallas as pl
from jax.experimental.pallas import tpu as pltpu


# ---------------------------------------------------------------------------
# Dispatch thresholds (bytes).
# ---------------------------------------------------------------------------
_XLA_COPY_MAX_BYTES = 1 << 20        # <= 1 MiB: pallas launch overhead dominates,
                                     # let XLA emit (and possibly fuse/elide) the copy.
_CHUNKED_MIN_BYTES = 256 << 20       # >= 256 MiB: chunked DMA issue pays off (v7x).
_MAX_DMA_CHUNKS = 4


# ---------------------------------------------------------------------------
# Kernels (all operate on raw HBM refs: memory_space=pl.ANY, zero VMEM).
# ---------------------------------------------------------------------------
def _single_dma_copy_kernel(x_hbm_ref, o_hbm_ref, copy_sem):
    """One whole-tensor HBM->HBM DMA; no VMEM staging, no vreg traffic."""
    cp = pltpu.make_async_copy(x_hbm_ref, o_hbm_ref, copy_sem)
    cp.start()
    cp.wait()


def _make_chunked_dma_copy_kernel(n_chunks: int):
    """DMA one leading-dim chunk per grid step (grid is 'parallel' so on v7x
    the two TensorCores each drive their own DMA descriptors)."""

    def kernel(x_hbm_ref, o_hbm_ref, copy_sem):
        chunk = x_hbm_ref.shape[0] // n_chunks          # static
        start = pl.program_id(0) * chunk                # dynamic, chunk-aligned
        sl = pl.ds(start, chunk)
        cp = pltpu.make_async_copy(x_hbm_ref.at[sl], o_hbm_ref.at[sl], copy_sem)
        cp.start()
        cp.wait()

    return kernel


def _aliased_identity_kernel(x_hbm_ref, o_hbm_ref):
    """Used with input_output_aliases={0: 0}.  The output buffer either IS the
    (donated) input buffer or XLA has already materialized the input into it,
    so it already holds the correct bits at kernel entry: nothing to move."""
    del x_hbm_ref, o_hbm_ref  # intentionally no data movement


# ---------------------------------------------------------------------------
# pallas_call builders.
# ---------------------------------------------------------------------------
def _copy_cost(x: jax.Array) -> pl.CostEstimate:
    # HBM->HBM copy = read + write of the full tensor.
    nbytes = x.size * x.dtype.itemsize
    return pl.CostEstimate(flops=0, transcendentals=0, bytes_accessed=2 * nbytes)


def _pallas_dma_copy(x: jax.Array, n_chunks: int) -> jax.Array:
    if n_chunks <= 1:
        return pl.pallas_call(
            _single_dma_copy_kernel,
            out_shape=jax.ShapeDtypeStruct(x.shape, x.dtype),
            in_specs=[pl.BlockSpec(memory_space=pl.ANY)],
            out_specs=pl.BlockSpec(memory_space=pl.ANY),
            scratch_shapes=[pltpu.SemaphoreType.DMA(())],
            cost_estimate=_copy_cost(x),
        )(x)

    return pl.pallas_call(
        _make_chunked_dma_copy_kernel(n_chunks),
        out_shape=jax.ShapeDtypeStruct(x.shape, x.dtype),
        grid=(n_chunks,),
        in_specs=[pl.BlockSpec(memory_space=pl.ANY)],
        out_specs=pl.BlockSpec(memory_space=pl.ANY),
        scratch_shapes=[pltpu.SemaphoreType.DMA(())],
        compiler_params=pltpu.CompilerParams(dimension_semantics=("parallel",)),
        cost_estimate=_copy_cost(x),
    )(x)


def _pallas_aliased_identity(x: jax.Array) -> jax.Array:
    # Donation path: output aliases input.  When the caller no longer needs x
    # this is free; otherwise XLA inserts the (single) copy itself.
    return pl.pallas_call(
        _aliased_identity_kernel,
        out_shape=jax.ShapeDtypeStruct(x.shape, x.dtype),
        in_specs=[pl.BlockSpec(memory_space=pl.ANY)],
        out_specs=pl.BlockSpec(memory_space=pl.ANY),
        input_output_aliases={0: 0},
        cost_estimate=pl.CostEstimate(flops=0, transcendentals=0, bytes_accessed=0),
    )(x)


# ---------------------------------------------------------------------------
# Public wrapper: torch.cat([x], dim=1) for an NCHW tensor.
# ---------------------------------------------------------------------------
def cat_single(x: jax.Array, *, mode: str = "auto", _force_chunks: int = 0) -> jax.Array:
    """Equivalent of torch.cat([x481], dim=1).

    mode:
      "identity" -> return x (zero HBM traffic; the production answer — in JAX
                    arrays are immutable so buffer distinctness is never needed
                    for correctness, and this is also what 'donate x' means).
      "donate"   -> pallas_call with input_output_aliases={0: 0}; free when x
                    can be donated, one XLA-managed copy otherwise.
      "xla"      -> plain XLA copy (no custom-call launch overhead; fusible).
      "pallas"   -> explicit HBM->HBM DMA copy kernel (chunked if huge or if
                    _force_chunks > 1).
      "auto"     -> tiny tensors: "xla"; huge tensors: chunked "pallas";
                    otherwise single-DMA "pallas".
    """
    if mode == "identity":
        return x
    if mode == "donate":
        return _pallas_aliased_identity(x)
    if mode == "xla":
        return jnp.copy(x)

    nbytes = x.size * x.dtype.itemsize

    if mode == "auto":
        if nbytes <= _XLA_COPY_MAX_BYTES:
            # The module's real shape ([1,896,7,7] f32 ~172 KiB) lands here:
            # transfer < 1 us, so skip the custom-call/DMA-descriptor overhead.
            return jnp.copy(x)
        mode = "pallas"

    if mode != "pallas":
        raise ValueError(f"unknown mode: {mode!r}")

    n_chunks = 1
    if _force_chunks > 1:
        n_chunks = _force_chunks
    elif nbytes >= _CHUNKED_MIN_BYTES:
        n_chunks = _MAX_DMA_CHUNKS
    # Only chunk when the leading dim divides evenly; otherwise one DMA.
    if n_chunks > 1 and (x.shape[0] < n_chunks or x.shape[0] % n_chunks != 0):
        n_chunks = 1
    return _pallas_dma_copy(x, n_chunks)


if __name__ == "__main__":
    key = jax.random.PRNGKey(0)
    # Small NCHW input consistent with the module's forward (original shape
    # was [1, 896, 7, 7]; reduced here).
    x481 = jax.random.normal(key, (2, 4, 16, 16), dtype=jnp.float32)

    # 1) Explicit Pallas kernel: single whole-tensor HBM->HBM DMA.
    out = cat_single(x481, mode="pallas")
    jax.block_until_ready(out)
    assert out.shape == x481.shape and out.dtype == x481.dtype
    assert jnp.array_equal(out, x481)

    # 2) Chunked / parallel-grid DMA path (forced here at a small shape purely
    #    for coverage; auto-dispatch only uses it for very large tensors).
    out_chunked = cat_single(x481, mode="pallas", _force_chunks=2)
    jax.block_until_ready(out_chunked)
    assert jnp.array_equal(out_chunked, x481)

    # 3) Donation/aliasing path (free when x is donated).
    out_donate = cat_single(x481, mode="donate")
    jax.block_until_ready(out_donate)
    assert jnp.array_equal(out_donate, x481)

    # 4) Auto path: at this tiny size it dispatches to a plain XLA copy.
    out_auto = cat_single(x481, mode="auto")
    jax.block_until_ready(out_auto)
    assert jnp.array_equal(out_auto, x481)

    # 5) Zero-cost identity path.
    assert jnp.array_equal(cat_single(x481, mode="identity"), x481)

    print("KERNEL_OK")
</pallas_src>

<mosaic_0001>
module attributes {stable_mosaic.version = 11 : i64} {
  func.func @_single_dma_copy_kernel(%arg0: memref<2x4x16x16xf32, #tpu.memory_space<any>>, %arg1: memref<2x4x16x16xf32, #tpu.memory_space<any>>, %arg2: memref<!tpu.dma_semaphore, #tpu.memory_space<semaphore_mem>>) attributes {dimension_semantics = [], scalar_prefetch = 0 : i64, scratch_operands = 1 : i64, tpu.core_type = #tpu.core_type<tc>} {
    tpu.enqueue_dma source(%arg0 : memref<2x4x16x16xf32, #tpu.memory_space<any>>) target(%arg1 : memref<2x4x16x16xf32, #tpu.memory_space<any>>) target_semaphore(%arg2 : memref<!tpu.dma_semaphore, #tpu.memory_space<semaphore_mem>>)
    tpu.wait_dma2 semaphore(%arg2 : memref<!tpu.dma_semaphore, #tpu.memory_space<semaphore_mem>>) src(%arg0 : memref<2x4x16x16xf32, #tpu.memory_space<any>>) dst(%arg1 : memref<2x4x16x16xf32, #tpu.memory_space<any>>)
    return
  }
}

</mosaic_0001>

<bundles_post_ra>
// kernel: tpu_custom_call.1
= control target key start
LH: loop header
LB: loop body
LE: loop exit
PB: predicated region body
PF: predicated region fallthrough
CT: control target
= control target key end

     0   :  { %s36_s6 = smov [#allocation2]   ;;  %s37_s7 = smov [#allocation3]   ;;  %s55_s0 = inlined_call_operand.hbm [shape: f32[2,4,16,16], index: 0, kind: input, shape index: {}]   ;;  %s56_s1 = inlined_call_operand.hbm [shape: f32[2,4,16,16], index: 1, kind: output, shape index: {}]  }
   0x1   :  { %s38_s8 = smov 0  }
   0x2   :  { %18 = dma.general %s55_s0, 2048, %s56_s1, %s36_s6, %s37_s7, [#allocation4], %s38_s8, 0  }
   0x3   :  { %34 = dma.done.wait [#allocation2], 2048 }
   0x4   :  { %35 = vsyncadd [#allocation2], 4294965248 }
   0x5   :  { %24 = vsyncmov [#allocation2] }
   0x8   :  { %s25_s13 = vpop.sfrf %24 }
   0x9   :  { %p30_p0 = scmp.ne.s32.totalorder %s25_s13, 0 }
   0xb   :  { %29 = shalt.err (%p30_p0)  }

</bundles_post_ra>
